<compile_context>
chip_gen: v6e
topology: v6e:2x2x1
jax: 0.10.0
libtpu: 0.0.40
codegen_flags: <defaults>
</compile_context>

<pallas_src>
import functools

import jax
import jax.numpy as jnp
from jax.experimental import pallas as pl
from jax.experimental.pallas import tpu as pltpu

LEAKY_SLOPE = 0.01  # nn.LeakyReLU default
BN_EPS = 1e-5       # nn.BatchNorm2d default


# ----------------------------------------------------------------------------
# Small helpers
# ----------------------------------------------------------------------------
def _round_up(x, m):
    return ((x + m - 1) // m) * m


def _pick_tile(total, cap):
    """Largest multiple of 128 <= cap that divides `total` (total % 128 == 0)."""
    if total <= cap:
        return total
    return max(c for c in range(128, cap + 1, 128) if total % c == 0)


def _apply_activation(y, activation):
    if activation == "leaky_relu":
        return jnp.where(y > 0, y, LEAKY_SLOPE * y)
    if activation == "sigmoid":
        return jax.nn.sigmoid(y)
    return y


# ----------------------------------------------------------------------------
# Pallas kernels: out = act(X @ W + shift), X/W bf16, accumulation f32.
# ----------------------------------------------------------------------------
def _matmul_bias_act_kernel(x_ref, w_ref, b_ref, o_ref, *, activation):
    # Single K block: no accumulator scratch round-trip needed.
    y = jnp.dot(x_ref[...], w_ref[...], preferred_element_type=jnp.float32)
    o_ref[...] = _apply_activation(y + b_ref[...], activation).astype(o_ref.dtype)


def _matmul_bias_act_reduce_kernel(x_ref, w_ref, b_ref, o_ref, acc_ref, *, activation):
    k = pl.program_id(2)
    prod = jnp.dot(x_ref[...], w_ref[...], preferred_element_type=jnp.float32)

    @pl.when(k == 0)
    def _():
        acc_ref[...] = prod          # direct write on first step (no zero-fill pass)

    @pl.when(k > 0)
    def _():
        acc_ref[...] += prod

    @pl.when(k == pl.num_programs(2) - 1)
    def _():
        y = _apply_activation(acc_ref[...] + b_ref[...], activation)
        o_ref[...] = y.astype(o_ref.dtype)


def fused_matmul(x, dense, activation="none", out_dtype=jnp.bfloat16):
    """act(x @ W + shift); W pre-folded / pre-padded / bf16 (see _prep_dense)."""
    M, K = x.shape
    assert K == dense["K"], (K, dense["K"])
    wp, bp = dense["w"], dense["b"]
    Kp, Np = wp.shape

    tm = min(256, _round_up(M, 8))
    Mp = _round_up(M, tm)
    tn = _pick_tile(Np, 512)
    tk = _pick_tile(Kp, 1024)
    nk = Kp // tk

    xp = jnp.pad(x.astype(jnp.bfloat16), ((0, Mp - M), (0, Kp - K)))

    if nk == 1:
        out = pl.pallas_call(
            functools.partial(_matmul_bias_act_kernel, activation=activation),
            out_shape=jax.ShapeDtypeStruct((Mp, Np), out_dtype),
            grid_spec=pltpu.PrefetchScalarGridSpec(
                num_scalar_prefetch=0,
                grid=(Mp // tm, Np // tn),
                in_specs=[
                    pl.BlockSpec((tm, Kp), lambda i, j: (i, 0)),
                    pl.BlockSpec((Kp, tn), lambda i, j: (0, j)),
                    pl.BlockSpec((1, tn), lambda i, j: (0, j)),
                ],
                out_specs=pl.BlockSpec((tm, tn), lambda i, j: (i, j)),
            ),
            compiler_params=pltpu.CompilerParams(
                dimension_semantics=("parallel", "parallel")),
        )(xp, wp, bp)
    else:
        out = pl.pallas_call(
            functools.partial(_matmul_bias_act_reduce_kernel, activation=activation),
            out_shape=jax.ShapeDtypeStruct((Mp, Np), out_dtype),
            grid_spec=pltpu.PrefetchScalarGridSpec(
                num_scalar_prefetch=0,
                grid=(Mp // tm, Np // tn, nk),
                in_specs=[
                    pl.BlockSpec((tm, tk), lambda i, j, k: (i, k)),
                    pl.BlockSpec((tk, tn), lambda i, j, k: (k, j)),
                    pl.BlockSpec((1, tn), lambda i, j, k: (0, j)),
                ],
                out_specs=pl.BlockSpec((tm, tn), lambda i, j, k: (i, j)),
                scratch_shapes=[pltpu.VMEM((tm, tn), jnp.float32)],
            ),
            compiler_params=pltpu.CompilerParams(
                dimension_semantics=("parallel", "parallel", "arbitrary")),
        )(xp, wp, bp)
    return out[:M, :dense["N"]]


# ----------------------------------------------------------------------------
# Fused linear chain: encoder_lin (3 layers) + decoder_lin (3 layers) in ONE
# pallas_call with all weights VMEM-resident (bf16, ~17 MiB total).
# ----------------------------------------------------------------------------
def _linear_chain_kernel(x_ref, *refs):
    o_ref = refs[-1]
    layer_refs = refs[:-1]              # (w1, b1, ..., w6, b6)

    def dense(h, w_ref, b_ref, act):
        y = jnp.dot(h, w_ref[...], preferred_element_type=jnp.float32) + b_ref[...]
        if act:
            y = jnp.where(y > 0, y, LEAKY_SLOPE * y)
        return y.astype(jnp.bfloat16)

    # encoder_lin: LeakyReLU, LeakyReLU, none (latent); decoder_lin: 3x LeakyReLU.
    acts = (True, True, False, True, True, True)
    h = x_ref[...]
    for idx, act in enumerate(acts):
        h = dense(h, layer_refs[2 * idx], layer_refs[2 * idx + 1], act)
    o_ref[...] = h


def linear_chain(z, chain):
    M, K = z.shape
    assert K == chain[0]["K"]
    Mp = _round_up(M, 8)
    zp = jnp.pad(z.astype(jnp.bfloat16),
                 ((0, Mp - M), (0, chain[0]["w"].shape[0] - K)))
    args = [zp]
    for layer in chain:
        args += [layer["w"], layer["b"]]

    vspec = pl.BlockSpec(memory_space=pltpu.MemorySpace.VMEM)
    out = pl.pallas_call(
        _linear_chain_kernel,
        out_shape=jax.ShapeDtypeStruct((Mp, chain[-1]["w"].shape[1]), jnp.bfloat16),
        in_specs=[vspec] * len(args),
        out_specs=vspec,
        compiler_params=pltpu.CompilerParams(
            # ~17 MiB resident bf16 weights; stay well below v7x's 64 MiB VMEM.
            vmem_limit_bytes=48 * 1024 * 1024,
        ),
    )(*args)
    return out[:M, :chain[-1]["N"]]


# ----------------------------------------------------------------------------
# Glue (plain JAX): im2col patch extraction (patch order = (kh, kw, c_in)).
# ----------------------------------------------------------------------------
def im2col(x_nhwc, kh, kw, stride, pad_h, pad_w):
    x = jnp.pad(x_nhwc, ((0, 0), pad_h, pad_w, (0, 0)))
    n, hp, wp, c = x.shape
    ho = (hp - kh) // stride + 1
    wo = (wp - kw) // stride + 1
    patches = []
    for di in range(kh):
        for dj in range(kw):
            patches.append(
                x[:, di:di + stride * ho:stride, dj:dj + stride * wo:stride, :])
    cols = jnp.stack(patches, axis=3).reshape(n, ho, wo, kh * kw * c)
    return cols.reshape(n * ho * wo, kh * kw * c), ho, wo


# ----------------------------------------------------------------------------
# Deterministic synthetic parameters (math-level, PyTorch-equivalent semantics).
# ----------------------------------------------------------------------------
def make_params(key, in_channels, latent_size):
    keys = iter(jax.random.split(key, 48))

    def conv_like(ci, co, k, with_bn):
        fan_in = ci * k * k
        w = jax.random.normal(next(keys), (k, k, ci, co), jnp.float32) / jnp.sqrt(fan_in)
        b = 0.01 * jax.random.normal(next(keys), (co,), jnp.float32)
        d = dict(w=w, b=b, has_bn=with_bn)
        if with_bn:
            d["gamma"] = 1.0 + 0.1 * jax.random.normal(next(keys), (co,), jnp.float32)
            d["beta"] = 0.1 * jax.random.normal(next(keys), (co,), jnp.float32)
            d["running_mean"] = jnp.zeros((co,), jnp.float32)   # fresh eval-mode stats
            d["running_var"] = jnp.ones((co,), jnp.float32)
        return d

    def linear(di, do):
        w = jax.random.normal(next(keys), (di, do), jnp.float32) / jnp.sqrt(di)
        b = 0.01 * jax.random.normal(next(keys), (do,), jnp.float32)
        return dict(w=w, b=b)

    p = {}
    enc_cfg = [(in_channels, 32, 6, 2, 2), (32, 64, 5, 2, 2),
               (64, 128, 3, 2, 1), (128, 256, 3, 2, 1)]
    p["enc_conv"] = [dict(conv_like(ci, co, k, True), k=k, stride=s, pad=pd)
                     for (ci, co, k, s, pd) in enc_cfg]
    p["enc_lin"] = [linear(4096, 1024), linear(1024, 256), linear(256, latent_size)]
    p["dec_lin"] = [linear(latent_size, 256), linear(256, 1024), linear(1024, 4096)]
    # ConvTranspose2d weights stored as (kh, kw, c_in, c_out), transposed-conv semantics.
    dec_cfg = [(256, 128, 3, 2, 1, True), (128, 64, 3, 2, 1, True),
               (64, 32, 5, 2, 2, True), (32, 3, 6, 2, 2, False)]
    p["dec_conv"] = [dict(conv_like(ci, co, k, bn), k=k, stride=s, pad=pd)
                     for (ci, co, k, s, pd, bn) in dec_cfg]
    return p


# ----------------------------------------------------------------------------
# One-time preparation: fold BN, flatten/pad/cast weights for the kernels.
# ----------------------------------------------------------------------------
def _bn_fold(layer):
    """Eval-mode BN folded into per-out-channel (scale, shift), general formula."""
    co = layer["b"].shape[0]
    if layer["has_bn"]:
        scale = layer["gamma"] / jnp.sqrt(layer["running_var"] + BN_EPS)
        shift = (layer["b"] - layer["running_mean"]) * scale + layer["beta"]
    else:
        scale = jnp.ones((co,), jnp.float32)
        shift = layer["b"]
    return scale, shift


def _prep_dense(w2d, shift, scale=None):
    """Fold scale into the weight, pad K/N to 128 multiples, cast weight to bf16."""
    K, N = w2d.shape
    if scale is not None:
        w2d = w2d * scale[None, :]
    Kp, Np = _round_up(K, 128), _round_up(N, 128)
    wp = jnp.pad(w2d, ((0, Kp - K), (0, Np - N))).astype(jnp.bfloat16)
    bp = jnp.pad(shift.reshape(1, N), ((0, 0), (0, Np - N))).astype(jnp.float32)
    return dict(w=wp, b=bp, K=K, N=N)


def _prep_deconv(layer, h_in):
    """ConvTranspose2d(stride=2) -> ONE stride-1 conv with 4*C_out phase channels.

    Output pixel o = 2t+r only receives kernel taps m with m = (o+pad) mod 2,
    so the deconv splits into 4 phase convolutions on the *un-dilated* input.
    All four phases are packed along the output-channel axis of a single
    (nu,nu) stride-1 conv and re-interleaved with a depth-to-space afterwards.
    """
    k, pad = layer["k"], layer["pad"]
    wt = layer["w"]                          # (k, k, c_in, c_out)
    ci, co = wt.shape[2], wt.shape[3]
    h_out = (h_in - 1) * 2 - 2 * pad + k

    phases = []
    for r in (0, 1):
        q = (r + pad) % 2                    # kernel-tap parity feeding this phase
        d = (r + pad - q) // 2               # input offset of the last tap
        nu = (k - 1 - q) // 2 + 1            # number of taps of that parity
        left = nu - 1 - d                    # left padding this phase needs
        phases.append((q, nu, left))
    nu_max = max(ph[1] for ph in phases)
    left_sh = max(ph[2] for ph in phases)
    cnt = (h_out + 1) // 2                   # shared phase-grid size (phase r=0 is largest)
    right_sh = (cnt + nu_max - 1) - h_in - left_sh
    assert left_sh >= 0 and right_sh >= 0

    wc = jnp.zeros((nu_max, nu_max, ci, 4 * co), jnp.float32)
    for rh in (0, 1):
        qh, nuh, lh = phases[rh]
        for rw in (0, 1):
            qw, nuw, lw = phases[rw]
            # flipped sub-kernel of this phase, placed at its alignment offset
            sub = wt[qh::2, qw::2, :, :][::-1, ::-1, :, :]    # (nuh, nuw, ci, co)
            off_h, off_w = left_sh - lh, left_sh - lw
            cidx = (rh * 2 + rw) * co
            wc = wc.at[off_h:off_h + nuh, off_w:off_w + nuw, :, cidx:cidx + co].set(sub)

    scale, shift = _bn_fold(layer)
    dense = _prep_dense(wc.reshape(nu_max * nu_max * ci, 4 * co),
                        jnp.tile(shift, 4), jnp.tile(scale, 4))
    return dict(dense=dense, nu=nu_max, left=left_sh, right=right_sh,
                cnt=cnt, h_out=h_out, co=co)


def prepare_params(params):
    prep = {"enc_conv": [], "dec_conv": []}
    for layer in params["enc_conv"]:
        k, ci = layer["k"], layer["w"].shape[2]
        scale, shift = _bn_fold(layer)
        dense = _prep_dense(layer["w"].reshape(k * k * ci, -1), shift, scale)
        prep["enc_conv"].append(dict(dense=dense, k=k, stride=layer["stride"],
                                     pad=layer["pad"]))
    # one fused chain: encoder_lin (3) + decoder_lin (3)
    prep["lin_chain"] = [_prep_dense(l["w"], l["b"])
                         for l in params["enc_lin"] + params["dec_lin"]]
    h = 4                                    # decoder starts from the (256, 4, 4) unflatten
    for layer in params["dec_conv"]:
        dc = _prep_deconv(layer, h)
        prep["dec_conv"].append(dc)
        h = dc["h_out"]
    return prep


# ----------------------------------------------------------------------------
# Forward pass (matches Autoencoder.forward: encode -> decode -> sigmoid).
# ----------------------------------------------------------------------------
def autoencoder_forward(x_nchw, prep):
    n = x_nchw.shape[0]
    x = jnp.transpose(x_nchw, (0, 2, 3, 1)).astype(jnp.bfloat16)   # NHWC, bf16

    # ---- Encoder CNN: Conv2d (+ folded BatchNorm) + LeakyReLU, x4 ----
    for layer in prep["enc_conv"]:
        k, s, pd = layer["k"], layer["stride"], layer["pad"]
        cols, ho, wo = im2col(x, k, k, s, (pd, pd), (pd, pd))
        y = fused_matmul(cols, layer["dense"], "leaky_relu")
        x = y.reshape(n, ho, wo, layer["dense"]["N"])

    # ---- Flatten (PyTorch NCHW channel-major order) ----
    z = jnp.transpose(x, (0, 3, 1, 2)).reshape(n, -1)              # (N, 4096)

    # ---- encoder_lin + decoder_lin fused in one VMEM-resident kernel ----
    z = linear_chain(z, prep["lin_chain"])                         # (N, 4096)

    # ---- Unflatten to (N, 256, 4, 4), back to NHWC ----
    x = jnp.transpose(z.reshape(n, 256, 4, 4), (0, 2, 3, 1))

    # ---- Decoder: ConvTranspose2d (+BN+LeakyReLU x3), sigmoid on the last ----
    n_dec = len(prep["dec_conv"])
    for i, dc in enumerate(prep["dec_conv"]):
        act = "leaky_relu" if i < n_dec - 1 else "sigmoid"
        cols, _, _ = im2col(x, dc["nu"], dc["nu"], 1,
                            (dc["left"], dc["right"]), (dc["left"], dc["right"]))
        y = fused_matmul(cols, dc["dense"], act)                   # (n*cnt*cnt, 4*co)
        y = y.reshape(n, dc["cnt"], dc["cnt"], 2, 2, dc["co"])
        y = jnp.transpose(y, (0, 1, 3, 2, 4, 5))                   # depth-to-space
        y = y.reshape(n, 2 * dc["cnt"], 2 * dc["cnt"], dc["co"])
        x = y[:, :dc["h_out"], :dc["h_out"], :]

    return jnp.transpose(x, (0, 3, 1, 2)).astype(jnp.float32)      # NCHW f32


# ----------------------------------------------------------------------------
# Pure-JAX float32 reference (PyTorch eval-mode semantics) for verification.
# ----------------------------------------------------------------------------
def reference_forward(x_nchw, params):
    dn = ("NHWC", "HWIO", "NHWC")

    def bn(layer, y):
        if not layer["has_bn"]:
            return y
        inv = layer["gamma"] / jnp.sqrt(layer["running_var"] + BN_EPS)
        return (y - layer["running_mean"]) * inv + layer["beta"]

    def lrelu(y):
        return jnp.where(y > 0, y, LEAKY_SLOPE * y)

    x = jnp.transpose(x_nchw, (0, 2, 3, 1)).astype(jnp.float32)
    for layer in params["enc_conv"]:
        s, pd = layer["stride"], layer["pad"]
        y = jax.lax.conv_general_dilated(x, layer["w"], (s, s), [(pd, pd), (pd, pd)],
                                         dimension_numbers=dn) + layer["b"]
        x = lrelu(bn(layer, y))
    z = jnp.transpose(x, (0, 3, 1, 2)).reshape(x.shape[0], -1)
    for i, layer in enumerate(params["enc_lin"]):
        z = z @ layer["w"] + layer["b"]
        if i < len(params["enc_lin"]) - 1:
            z = lrelu(z)
    for layer in params["dec_lin"]:
        z = lrelu(z @ layer["w"] + layer["b"])       # Dropout = identity in eval
    x = jnp.transpose(z.reshape(z.shape[0], 256, 4, 4), (0, 2, 3, 1))
    for i, layer in enumerate(params["dec_conv"]):
        k, s, pd = layer["k"], layer["stride"], layer["pad"]
        y = jax.lax.conv_general_dilated(
            x, layer["w"][::-1, ::-1, :, :], (1, 1),
            [(k - 1 - pd, k - 1 - pd)] * 2, lhs_dilation=(s, s),
            dimension_numbers=dn) + layer["b"]
        y = bn(layer, y)
        x = lrelu(y) if i < len(params["dec_conv"]) - 1 else jax.nn.sigmoid(y)
    return jnp.transpose(x, (0, 3, 1, 2))


if __name__ == "__main__":
    key = jax.random.PRNGKey(0)
    k_in, k_par = jax.random.split(key)

    batch, in_channels, latent_size = 2, 3, 32
    # encoder_lin expects 4096 = 256*4*4 features -> input spatial must be 64x64
    x = jax.random.normal(k_in, (batch, in_channels, 64, 64), jnp.float32)

    params = make_params(k_par, in_channels, latent_size)
    prep = prepare_params(params)

    out = autoencoder_forward(x, prep)
    out = jax.block_until_ready(out)

    # ConvTranspose stack applied to (4,4) latents yields 50x50 (PyTorch semantics)
    assert out.shape == (batch, 3, 50, 50), out.shape
    assert bool(jnp.all(jnp.isfinite(out)))
    assert bool(jnp.all((out >= 0.0) & (out <= 1.0)))   # sigmoid output range

    # numerical check vs. pure-JAX reference (bf16 MXU operands -> loose tolerance)
    ref = jax.block_until_ready(reference_forward(x, params))
    max_err = float(jnp.max(jnp.abs(out - ref)))
    assert max_err < 0.06, max_err

    print("KERNEL_OK")
</pallas_src>

<mosaic_0001>
module attributes {stable_mosaic.version = 11 : i64} {
  func.func @_matmul_bias_act_kernel(%arg0: i32, %arg1: i32, %arg2: memref<256x128xbf16, #tpu.memory_space<vmem>>, %arg3: memref<128x128xbf16, #tpu.memory_space<vmem>>, %arg4: memref<1x128xf32, #tpu.memory_space<vmem>>, %arg5: memref<256x128xbf16, #tpu.memory_space<vmem>>) attributes {dimension_semantics = [#tpu.dimension_semantics<parallel>, #tpu.dimension_semantics<parallel>], iteration_bounds = array<i64: 8, 1>, scalar_prefetch = 0 : i64, scratch_operands = 0 : i64, tpu.core_type = #tpu.core_type<tc>, window_params = [{transform_indices = @transform_0, window_bounds = array<i64: 256, 128>}, {transform_indices = @transform_1, window_bounds = array<i64: 128, 128>}, {transform_indices = @transform_2, window_bounds = array<i64: 1, 128>}, {transform_indices = @transform_3, window_bounds = array<i64: 256, 128>}]} {
    %c0 = arith.constant 0 : index
    %c0_0 = arith.constant 0 : index
    %0 = vector.load %arg2[%c0, %c0_0] : memref<256x128xbf16, #tpu.memory_space<vmem>>, vector<256x128xbf16>
    %c0_1 = arith.constant 0 : index
    %c0_2 = arith.constant 0 : index
    %1 = vector.load %arg3[%c0_1, %c0_2] : memref<128x128xbf16, #tpu.memory_space<vmem>>, vector<128x128xbf16>
    %cst = arith.constant dense<0.000000e+00> : vector<256x128xf32>
    %2 = tpu.matmul %0, %1, %cst {dimension_numbers = #tpu.dot_dimension_numbers<[1], [0], [0], [1], [0, 0, 1, 1], [], []>} : vector<256x128xbf16>, vector<128x128xbf16>, vector<256x128xf32> -> vector<256x128xf32>
    %c0_3 = arith.constant 0 : index
    %c0_4 = arith.constant 0 : index
    %3 = vector.load %arg4[%c0_3, %c0_4] : memref<1x128xf32, #tpu.memory_space<vmem>>, vector<1x128xf32>
    %4 = vector.broadcast %3 : vector<1x128xf32> to vector<256x128xf32>
    %5 = arith.addf %2, %4 : vector<256x128xf32>
    %cst_5 = arith.constant 0.000000e+00 : f32
    %6 = vector.broadcast %cst_5 : f32 to vector<256x128xf32>
    %7 = arith.cmpf ogt, %5, %6 : vector<256x128xf32>
    %cst_6 = arith.constant 0.00999999977 : f32
    %8 = vector.broadcast %cst_6 : f32 to vector<256x128xf32>
    %9 = arith.mulf %8, %5 : vector<256x128xf32>
    %10 = arith.select %7, %5, %9 : vector<256x128xi1>, vector<256x128xf32>
    %11 = arith.truncf %10 : vector<256x128xf32> to vector<256x128xbf16>
    %c0_7 = arith.constant 0 : index
    %c0_8 = arith.constant 0 : index
    %12 = vector.load %arg5[%c0_7, %c0_8] : memref<256x128xbf16, #tpu.memory_space<vmem>>, vector<256x128xbf16>
    tpu.vector_store %arg5[%c0_7, %c0_8], %11 {strides = array<i32>} : memref<256x128xbf16, #tpu.memory_space<vmem>>, vector<256x128xbf16>,
    return
  }
  func.func @transform_0(%arg0: i32, %arg1: i32) -> (i32, i32) {
    %c0_i32 = arith.constant 0 : i32
    %c0_i32_0 = arith.constant 0 : i32
    return %arg0, %c0_i32 : i32, i32
  }
  func.func @transform_1(%arg0: i32, %arg1: i32) -> (i32, i32) {
    %c0_i32 = arith.constant 0 : i32
    %c0_i32_0 = arith.constant 0 : i32
    return %c0_i32, %arg1 : i32, i32
  }
  func.func @transform_2(%arg0: i32, %arg1: i32) -> (i32, i32) {
    %c0_i32 = arith.constant 0 : i32
    %c0_i32_0 = arith.constant 0 : i32
    return %c0_i32, %arg1 : i32, i32
  }
  func.func @transform_3(%arg0: i32, %arg1: i32) -> (i32, i32) {
    %c0_i32 = arith.constant 0 : i32
    return %arg0, %arg1 : i32, i32
  }
}

</mosaic_0001>

<bundles_post_ra>
// kernel: tpu_custom_call.1
= control target key start
LH: loop header
LB: loop body
LE: loop exit
PB: predicated region body
PF: predicated region fallthrough
CT: control target
= control target key end

     0   :  { %8 = vsyncpa [#allocation3], 0  ;;  %s1808_s0 = inlined_call_operand.hbm [shape: bf16[2048,128], index: 0, kind: input, shape index: {}]   ;;  %s1809_s1 = inlined_call_operand.hbm [shape: bf16[128,128], index: 1, kind: input, shape index: {}]   ;;  %s1810_s2 = inlined_call_operand.vmem [shape: f32[1,128], index: 2, kind: input, shape index: {}]   ;;  %s1811_s3 = inlined_call_operand.hbm [shape: bf16[2048,128], index: 3, kind: output, shape index: {}]  }
   0x1   :  { %10 = vsyncpa [#allocation3 + $0x1], 0 }
   0x2   :  { %11 = vsyncpa [#allocation6], 0 }
   0x3   :  { %12 = vsyncpa [#allocation4], 0 }
   0x4   :  { %14 = vsyncpa [#allocation4 + $0x1], 0  ;;  %s1540_s12 = smov 0   ;;  %s1542_s13 = smov 0  }
   0x5   :  { %s1544_s14 = smov 0   ;;  %s1546_s15 = smov 0  }
   0x6   :  { %s1548_s16 = smov 0   ;;  %s1550_s17 = smov 0  }
   0x7 LB: > { %s980_s18 = sadd.s32 4294967295, %s1511_s17   ;;  %s981_s19 = sadd.s32 4294967294, %s1511_s17   ;;  %s1511_s17 = sphi %s1550_s17, %s20_s17   ;;  %s1507_s16 = sphi %s1548_s16, %s1832_s16   ;;  %s1503_s15 = sphi %s1546_s15, %s1831_s15   ;;  %s1499_s14 = sphi %s1544_s14, %s1830_s14   ;;  %s1495_s13 = sphi %s1542_s13, %s1829_s13   ;;  %s1491_s12 = sphi %s1540_s12, %s1828_s12  }
   0x8   : > { %p52_p0 = scmp.ne.s32.totalorder %s1495_s13, %s1491_s12  ;;  %p1574_p1 = scmp.eq.s32.totalorder %s980_s18, 0 }
   0x9   : > { %p1578_p2 = scmp.eq.s32.totalorder %s980_s18, 7  ;;  %p136_p3 = scmp.eq.s32.totalorder %s981_s19, 7 }
   0xa   : > { %p1584_p4 = por %p1574_p1, %p52_p0  ;;  %p982_p5 = scmp.ge.s32.totalorder %s1511_s17, 1 }
   0xb   : > { %p1589_p6 = por %p136_p3, %p52_p0  ;;  %p143_p7 = scmp.lt.s32.totalorder %s1511_s17, 9 }
   0xc   : > { %s1513_s25 = smov [#allocation5]   ;;  %s32_s28 = sadd.s32 1, %s1507_s16 }
   0xd   : > { %s1818_s23 = scalar_select %p1589_p6, 1, 0 }
   0xe   : > { %p1594_p8 = pnand %p982_p5, %p143_p7  ;;  %s157_s26 = sshll.u32 %s1513_s25, 4  ;;  %s158_s26 = int_to_ptr.vmem [resolvable:$true] %s157_s26 }
   0xf   : > { %s1384_s29 = scalar_lea.vmem %s158_s26, 1024  ;;  %p1392_p3 = scmp.lt.s32.totalorder %s158_s26, %s158_s26 }
  0x10   : > { %p1280_p9 = pneg %p1594_p8  ;;  %p1385_p12 = scmp.ne.s32.totalorder %s158_s26, %s1384_s29 }
  0x11   : > { %p1393_p5 = scmp.lt.s32.totalorder %s1384_s29, %s1384_s29 }
  0x12   : > { %p1602_p10 = pnand %p1280_p9, %p1574_p1 }
  0x13   : > { %p1394_p7 = por %p1393_p5, %p1392_p3 }
  0x14   : > { %p1375_p11 = pneg %p1602_p10 }
  0x16   : > { %p1387_p13 = pnand %p1385_p12, %p1375_p11 }
  0x18   : > { %p1388_p0 = pneg %p1387_p13 }
  0x1a   : > { %p1395_p6 = pnand %p1394_p7, %p1388_p0 }
  0x1c   : > { %1398 = shalt.err (!%p1395_p6)
}
  0x1d   : > { %s1812_s30 = smov 64   ;;  %s1813_s4 = smov 4  }
  0x1e   : > { %1283 = dma.hbm_to_vmem [thread:$0]  (!%p1602_p10), %s1809_s1, 1024, %s158_s26, [#allocation6], %s1812_s30, %s1812_s30, %s1813_s4  }
  0x1f   : > { %p34_p6 = scmp.ge.s32.totalorder %s32_s28, 8  ;;  %s39_s7 = sadd.s32 1, %s1499_s14 }
  0x20   : > { %p46_p9 = scmp.ne.s32.totalorder %s1499_s14, %s1495_s13  ;;  %p47_p11 = scmp.eq.s32.totalorder %s1511_s17, 0 }
  0x21   : > { %s1834_s28 = smov (%p34_p6, %s32_s28), 0  ;;  %p1293_p0 = scmp.lt.s32.totalorder %s1511_s17, 8 }
  0x22   : > { %p1623_p12 = por %p47_p11, %p46_p9  ;;  %p1629_p13 = por %p1578_p2, %p46_p9 }
  0x23   : > { %s36_s10 = ssub.s32 %s1507_s16, %s1834_s28  ;;  %s177_s11 = sand.u32 1, %s1499_s14  }
  0x24   : > { %s1822_s9 = scalar_select %p1629_p13, 1, 0 }
  0x25   : > { %p37_p10 = scmp.eq.s32.totalorder %s36_s10, 0  ;;  %s986_s18 = sshll.u32 %s177_s11, 7 }
  0x26   : > { %s1055_s25 = sshll.u32 %s1507_s16, 11  ;;  %s181_s5 = scalar_lea.vmem [#allocation2], %s986_s18 }
  0x27   : > { %s1638_s19 = scalar_select %p37_p10, %s1499_s14, %s39_s7  }
  0x28   : > { %s187_s29 = scalar_lea.hbm %s1808_s0, %s1055_s25  ;;  %s188_s6 = sshll.u32 %s181_s5, 4  ;;  %s189_s6 = int_to_ptr.vmem [resolvable:$true] %s188_s6 }
  0x29   : > { %p1646_p2 = pnand %p1293_p0, %p1623_p12  ;;  %s178_s30 = scalar_lea.sflag [#allocation3], %s177_s11 }
  0x2a   : > { %s1412_s10 = scalar_lea.vmem %s189_s6, 2048  ;;  %s1516_s7 = smov [#allocation2]  }
  0x2b   : > { %p1401_p3 = pneg %p1646_p2  ;;  %p1413_p5 = scmp.ne.s32.totalorder %s189_s6, %s1412_s10 }
  0x2c   : > { %s1417_s4 = sshll.u32 %s1516_s7, 4  ;;  %s1418_s4 = int_to_ptr.vmem [resolvable:$false] %s1417_s4 }
  0x2d   : > { %p1415_p7 = pnand %p1413_p5, %p1401_p3  ;;  %s1419_s25 = scalar_lea.vmem %s1418_s4, 4096 }
  0x2e   : > { %p1420_p9 = scmp.lt.s32.totalorder %s189_s6, %s1418_s4  ;;  %p1421_p11 = scmp.lt.s32.totalorder %s1419_s25, %s1412_s10 }
  0x2f   : > { %p1416_p6 = pneg %p1415_p7 }
  0x30   : > { %p1422_p10 = por %p1421_p11, %p1420_p9 }
  0x32   : > { %p1423_p13 = pnand %p1422_p10, %p1416_p6 }
  0x34   : > { %1426 = shalt.err (!%p1423_p13)
}
  0x35   : > { %s1824_s8 = smov 4   ;;  %s1825_s18 = smov 64  }
  0x36   : > { %1287 = dma.hbm_to_vmem [thread:$0]  (!%p1646_p2), %s187_s29, 2048, %s189_s6, %s178_s30, %s1825_s18, %s1825_s18, %s1824_s8  }
  0x37   : > { %200 = sbr.rel (%p1594_p8) target bundleno = 344 (0x158), region = 32  ;;  %s1660_s11 = sand.u32 (!%p1594_p8), 1, %s1495_s13  }
  0x38   : > { %s990_s4 = sshll.u32 (!%p1594_p8), %s1660_s11, 7  ;;  %s203_s26 = scalar_lea.sflag (!%p1594_p8), [#allocation3], %s1660_s11 }
  0x39   : > { %s1666_s27 = scalar_lea.vmem (!%p1594_p8), [#allocation2], %s990_s4 }
  0x3c   : > { %1478 = dma.done.wait (%p1584_p4), %s203_s26, 2048  }
  0x3d   : > { %1480 = vsyncadd (%p1584_p4), %s203_s26, 4294965248 }
  0x3e   : > { %1482 = dma.done.wait (%p1574_p1), [#allocation6], 1024  }
  0x3f   : > { %1484 = vsyncadd (%p1574_p1), [#allocation6], 4294966272  ;;  %v1349_v0 = vld [vmem:[#allocation5 + $0x38] sm:$0xff]   ;;  %v1350_v1 = vld [vmem:[#allocation5 + $0x30] sm:$0xff]   ;;  %s1710_s24 = scalar_lea.vmem [#allocation7], %s990_s4  ;;  %s1088_s30 = sshll.u32 %s1503_s15, 11 }
  0x40   : > { %1208 = vmatprep.subr.bf16.mxu0 %v1349_v0  ;;  %1256 = vmatprep.subr.bf16.mxu1 %v1349_v0  ;;  %v1351_v2 = vld [vmem:[#allocation5 + $0x28] sm:$0xff]   ;;  %v1352_v3 = vld [vmem:[#allocation5 + $0x20] sm:$0xff]   ;;  %v1353_v6 = vld [vmem:[#allocation5 + $0x18] sm:$0xff]   ;;  %s873_s29 = sshll.u32 %s1710_s24, 4  ;;  %s1757_s21 = scalar_lea.hbm %s1811_s3, %s1088_s30  ;;  %s1759_s29 = int_to_ptr.vmem [resolvable:$true] %s873_s29 }
  0x41   : > { %1209 = vmatpush3.bf16.msra.mxu0 %v1349_v0  ;;  %1264 = vmatpush3.bf16.msra.mxu1 %v1349_v0  ;;  %v1357_v4 = vld [vmem:[%s1666_s27] sm:$0xff]   ;;  %v1354_v7 = vld [vmem:[#allocation5 + $0x10] sm:$0xff]   ;;  %v1355_v8 = vld [vmem:[#allocation5 + $0x8] sm:$0xff]   ;;  %s859_s15 = scalar_lea.sflag [#allocation4], %s1660_s11  ;;  %s1427_s10 = scalar_lea.vmem %s1759_s29, 2048 }
  0x42   : > { %1210 = vmatprep.subr.bf16.mxu0 %v1350_v1  ;;  %1257 = vmatprep.subr.bf16.mxu1 %v1350_v1  ;;  %v1358_v5 = vld [vmem:[%s1666_s27 + $0x40] sm:$0xff]   ;;  %v1359_v10 = vld [vmem:[%s1666_s27 + $0x8] sm:$0xff]   ;;  %v1361_v12 = vld [vmem:[%s1666_s27 + $0x10] sm:$0xff]   ;;  %p1428_p1 = scmp.ne.s32.totalorder %s1759_s29, %s1427_s10  ;;  %p1826_p4 = scmp.ne.s32.totalorder %s1822_s9, 0 }
  0x43   : > { %1224 = vmatprep.mubr.bf16.mxu0 %v1357_v4  ;;  %1240 = vmatprep.mubr.bf16.mxu1 %v1358_v5  ;;  %v1356_v9 = vld [vmem:[#allocation5] sm:$0xff]   ;;  %v1360_v11 = vld [vmem:[%s1666_s27 + $0x48] sm:$0xff]   ;;  %v1362_v13 = vld [vmem:[%s1666_s27 + $0x50] sm:$0xff]   ;;  %s1517_s7 = smov [#allocation7]  }
  0x44   : > { %v1363_v14 = vld [vmem:[%s1666_s27 + $0x18] sm:$0xff]   ;;  %v1365_v16 = vld [vmem:[%s1666_s27 + $0x20] sm:$0xff]   ;;  %v1367_v18 = vld [vmem:[%s1666_s27 + $0x28] sm:$0xff]   ;;  %p1429_p8 = pnand %p1428_p1, %p1826_p4  ;;  %s1431_s25 = sshll.u32 %s1517_s7, 4  ;;  %s1432_s25 = int_to_ptr.vmem [resolvable:$false] %s1431_s25 }
  0x45   : > { %1211 = vmatpush3.bf16.msra.mxu0 %v1350_v1  ;;  %1265 = vmatpush3.bf16.msra.mxu1 %v1350_v1  ;;  %v1364_v15 = vld [vmem:[%s1666_s27 + $0x58] sm:$0xff]   ;;  %v1366_v17 = vld [vmem:[%s1666_s27 + $0x60] sm:$0xff]   ;;  %v1368_v19 = vld [vmem:[%s1666_s27 + $0x68] sm:$0xff]   ;;  %s1433_s8 = scalar_lea.vmem %s1432_s25, 4096  ;;  %p1434_p13 = scmp.lt.s32.totalorder %s1759_s29, %s1432_s25 }
  0x46   : > { %1212 = vmatprep.subr.bf16.mxu0 %v1351_v2  ;;  %1258 = vmatprep.subr.bf16.mxu1 %v1351_v2  ;;  %v1369_v20 = vld [vmem:[%s1666_s27 + $0x30] sm:$0xff]   ;;  %v1371_v22 = vld [vmem:[%s1666_s27 + $0x38] sm:$0xff]   ;;  %v1695_v24 = vld [vmem:[%s1810_s2] ss:$0 sm:$0xff]  ;;  %p1430_p12 = pneg %p1429_p8  ;;  %p1435_p0 = scmp.lt.s32.totalorder %s1433_s8, %s1427_s10 }
  0x47   : > { %v1370_v21 = vld [vmem:[%s1666_s27 + $0x70] sm:$0xff]   ;;  %v1372_v23 = vld [vmem:[%s1666_s27 + $0x78] sm:$0xff]  }
  0x48   : > { %p1436_p2 = por %p1435_p0, %p1434_p13 }
  0x49   : > { %1213 = vmatpush3.bf16.msra.mxu0 %v1351_v2  ;;  %1266 = vmatpush3.bf16.msra.mxu1 %v1351_v2 }
  0x4a   : > { %1214 = vmatprep.subr.bf16.mxu0 %v1352_v3  ;;  %1259 = vmatprep.subr.bf16.mxu1 %v1352_v3  ;;  %p1437_p3 = pnand %p1436_p2, %p1430_p12 }
  0x4d   : > { %1215 = vmatpush3.bf16.msra.mxu0 %v1352_v3  ;;  %1267 = vmatpush3.bf16.msra.mxu1 %v1352_v3 }
  0x4e   : > { %1216 = vmatprep.subr.bf16.mxu0 %v1353_v6  ;;  %1260 = vmatprep.subr.bf16.mxu1 %v1353_v6 }
  0x51   : > { %1217 = vmatpush3.bf16.msra.mxu0 %v1353_v6  ;;  %1268 = vmatpush3.bf16.msra.mxu1 %v1353_v6 }
  0x52   : > { %1218 = vmatprep.subr.bf16.mxu0 %v1354_v7  ;;  %1261 = vmatprep.subr.bf16.mxu1 %v1354_v7 }
  0x55   : > { %1219 = vmatpush3.bf16.msra.mxu0 %v1354_v7  ;;  %1269 = vmatpush3.bf16.msra.mxu1 %v1354_v7 }
  0x56   : > { %1220 = vmatprep.subr.bf16.mxu0 %v1355_v8  ;;  %1262 = vmatprep.subr.bf16.mxu1 %v1355_v8 }
  0x59   : > { %1221 = vmatpush3.bf16.msra.mxu0 %v1355_v8  ;;  %1270 = vmatpush3.bf16.msra.mxu1 %v1355_v8 }
  0x5a   : > { %1222 = vmatprep.subr.bf16.mxu0 %v1356_v9  ;;  %1263 = vmatprep.subr.bf16.mxu1 %v1356_v9 }
  0x5d   : > { %1223 = vmatpush3.bf16.msra.mxu0 %v1356_v9  ;;  %1271 = vmatpush3.bf16.msra.mxu1 %v1356_v9 }
  0x60   : > { %1225 = vmatmul.mubr.bf16.vlgmr.msra.gmra.mxu0 %v1359_v10  ;;  %1241 = vmatmul.mubr.bf16.vlgmr.msra.gmra.mxu1 %v1360_v11 }
  0x61   : > { %1228 = vmatprep.mubr.bf16.mxu0 %v1361_v12  ;;  %1244 = vmatprep.mubr.bf16.mxu1 %v1362_v13 }
  0x68   : > { %1229 = vmatmul.mubr.bf16.gmra.mxu0 %v1363_v14  ;;  %1245 = vmatmul.mubr.bf16.gmra.mxu1 %v1364_v15 }
  0x69   : > { %1232 = vmatprep.mubr.bf16.mxu0 %v1365_v16  ;;  %1248 = vmatprep.mubr.bf16.mxu1 %v1366_v17 }
  0x70   : > { %1233 = vmatmul.mubr.bf16.gmra.mxu0 %v1367_v18  ;;  %1249 = vmatmul.mubr.bf16.gmra.mxu1 %v1368_v19 }
  0x71   : > { %1236 = vmatprep.mubr.bf16.mxu0 %v1369_v20  ;;  %1252 = vmatprep.mubr.bf16.mxu1 %v1370_v21 }
  0x78   : > { %1237 = vmatmul.mubr.bf16.gmra.mxu0 %v1371_v22  ;;  %1253 = vmatmul.mubr.bf16.gmra.mxu1 %v1372_v23 }
 0x120   : > { %v1226_v25 = vpop.f32.mrf.mxu0  ;;  %v1242_v26 = vpop.f32.mrf.mxu1 }
 0x121   : > { %v484_v27 = vadd.f32 %v1226_v25, %v1695_v24  ;;  %v548_v28 = vadd.f32 %v1242_v26, %v1695_v24 }
 0x122   : > { %v475_v29 = vpop.f32.mrf.mxu0  ;;  %v539_v30 = vpop.f32.mrf.mxu1 }
 0x123   : > { %vm604_vm0 = vcmp.gt.f32.partialorder %v484_v27, 0.0  ;;  %v636_v31 = vmul.f32 0.01, %v484_v27  ;;  %vm620_vm1 = vcmp.gt.f32.partialorder %v548_v28, 0.0  ;;  %v652_v32 = vmul.f32 0.01, %v548_v28 }
 0x124   : > { %v476_v33 = vadd.f32 %v1695_v24, %v475_v29  ;;  %v540_v34 = vadd.f32 %v1695_v24, %v539_v30  ;;  %v1227_v35 = vpop.f32.mrf.mxu0  ;;  %v1243_v36 = vpop.f32.mrf.mxu1 }
 0x125   : > { %v668_v37 = vsel %vm604_vm0, %v484_v27, %v636_v31  ;;  %v487_v38 = vadd.f32 %v1227_v35, %v1695_v24  ;;  %v551_v39 = vadd.f32 %v1243_v36, %v1695_v24  ;;  %v684_v40 = vsel %vm620_vm1, %v548_v28, %v652_v32 }
 0x126   : > { %vm602_vm2 = vcmp.gt.f32.partialorder %v476_v33, 0.0  ;;  %v634_v41 = vmul.f32 0.01, %v476_v33  ;;  %vm618_vm3 = vcmp.gt.f32.partialorder %v540_v34, 0.0  ;;  %v478_v42 = vpop.f32.mrf.mxu0  ;;  %v542_v43 = vpop.f32.mrf.mxu1  ;;  %v650_v47 = vmul.f32 0.01, %v540_v34 }
 0x127   : > { %vm605_vm4 = vcmp.gt.f32.partialorder %v487_v38, 0.0  ;;  %v637_v44 = vmul.f32 0.01, %v487_v38  ;;  %vm621_vm5 = vcmp.gt.f32.partialorder %v551_v39, 0.0  ;;  %v653_v45 = vmul.f32 0.01, %v551_v39 }
 0x128   : > { %v666_v46 = vsel %vm602_vm2, %v476_v33, %v634_v41  ;;  %v479_v48 = vadd.f32 %v1695_v24, %v478_v42  ;;  %v543_v49 = vadd.f32 %v1695_v24, %v542_v43  ;;  %v1230_v50 = vpop.f32.mrf.mxu0  ;;  %v1246_v51 = vpop.f32.mrf.mxu1  ;;  %v682_v63 = vsel %vm618_vm3, %v540_v34, %v650_v47 }
 0x129   : > { %v669_v52 = vsel %vm605_vm4, %v487_v38, %v637_v44  ;;  %v685_v53 = vsel %vm621_vm5, %v551_v39, %v653_v45  ;;  %v500_v54 = vadd.f32 %v1230_v50, %v1695_v24  ;;  %v564_v55 = vadd.f32 %v1246_v51, %v1695_v24 }
 0x12a   : > { %v1097_v56 = vpack.c.bf16 %v669_v52, %v668_v37  ;;  %v1137_v57 = vpack.c.bf16 %v685_v53, %v684_v40  ;;  %vm603_vm6 = vcmp.gt.f32.partialorder %v479_v48, 0.0  ;;  %v635_v58 = vmul.f32 0.01, %v479_v48  ;;  %v491_v59 = vpop.f32.mrf.mxu0  ;;  %v555_v60 = vpop.f32.mrf.mxu1 }
 0x12b   : > { %vm619_vm7 = vcmp.gt.f32.partialorder %v543_v49, 0.0  ;;  %v651_v61 = vmul.f32 0.01, %v543_v49  ;;  %vm608_vm8 = vcmp.gt.f32.partialorder %v500_v54, 0.0  ;;  %v640_v62 = vmul.f32 0.01, %v500_v54 }
 0x12c   : > { %1169 = vst [vmem:[%s1710_s24 + $0x8] sm:$0xff] %v1097_v56   ;;  %1177 = vst [vmem:[%s1710_s24 + $0x48] sm:$0xff] %v1137_v57   ;;  %v667_v0 = vsel %vm603_vm6, %v479_v48, %v635_v58  ;;  %v656_v1 = vmul.f32 0.01, %v564_v55  ;;  %v492_v2 = vadd.f32 %v1695_v24, %v491_v59  ;;  %v1231_v3 = vpop.f32.mrf.mxu0  ;;  %v1247_v4 = vpop.f32.mrf.mxu1  ;;  %vm624_vm9 = vcmp.gt.f32.partialorder %v564_v55, 0.0 }
 0x12d   : > { %v1092_v5 = vpack.c.bf16 %v667_v0, %v666_v46  ;;  %v683_v6 = vsel %vm619_vm7, %v543_v49, %v651_v61  ;;  %v556_v7 = vadd.f32 %v1695_v24, %v555_v60  ;;  %v672_v9 = vsel %vm608_vm8, %v500_v54, %v640_v62 }
 0x12e   : > { %v1132_v8 = vpack.c.bf16 %v683_v6, %v682_v63  ;;  %vm606_vm10 = vcmp.gt.f32.partialorder %v492_v2, 0.0  ;;  %v638_v10 = vmul.f32 0.01, %v492_v2  ;;  %v494_v11 = vpop.f32.mrf.mxu0  ;;  %v558_v12 = vpop.f32.mrf.mxu1  ;;  %v503_v14 = vadd.f32 %v1231_v3, %v1695_v24 }
 0x12f   : > { %1093 = vst [vmem:[%s1710_s24] sm:$0xff] %v1092_v5   ;;  %vm622_vm11 = vcmp.gt.f32.partialorder %v556_v7, 0.0  ;;  %v654_v13 = vmul.f32 0.01, %v556_v7  ;;  %v567_v15 = vadd.f32 %v1247_v4, %v1695_v24  ;;  %v688_v16 = vsel %vm624_vm9, %v564_v55, %v656_v1 }
 0x130   : > { %1176 = vst [vmem:[%s1710_s24 + $0x40] sm:$0xff] %v1132_v8   ;;  %v670_v17 = vsel %vm606_vm10, %v492_v2, %v638_v10  ;;  %v495_v18 = vadd.f32 %v1695_v24, %v494_v11  ;;  %v559_v19 = vadd.f32 %v1695_v24, %v558_v12  ;;  %v1234_v20 = vpop.f32.mrf.mxu0  ;;  %v1250_v21 = vpop.f32.mrf.mxu1  ;;  %vm609_vm12 = vcmp.gt.f32.partialorder %v503_v14, 0.0 }
 0x131   : > { %v686_v22 = vsel %vm622_vm11, %v556_v7, %v654_v13  ;;  %v641_v23 = vmul.f32 0.01, %v503_v14  ;;  %vm625_vm13 = vcmp.gt.f32.partialorder %v567_v15, 0.0  ;;  %v657_v25 = vmul.f32 0.01, %v567_v15 }
 0x132   : > { %vm607_vm14 = vcmp.gt.f32.partialorder %v495_v18, 0.0  ;;  %v639_v26 = vmul.f32 0.01, %v495_v18  ;;  %vm623_vm15 = vcmp.gt.f32.partialorder %v559_v19, 0.0  ;;  %v507_v27 = vpop.f32.mrf.mxu0  ;;  %v571_v28 = vpop.f32.mrf.mxu1  ;;  %v655_v30 = vmul.f32 0.01, %v559_v19 }
 0x133   : > { %v673_v29 = vsel %vm609_vm12, %v503_v14, %v641_v23  ;;  %v516_v31 = vadd.f32 %v1234_v20, %v1695_v24  ;;  %v580_v32 = vadd.f32 %v1250_v21, %v1695_v24  ;;  %v689_v34 = vsel %vm625_vm13, %v567_v15, %v657_v25 }
 0x134   : > { %v1107_v33 = vpack.c.bf16 %v673_v29, %v672_v9  ;;  %v671_v35 = vsel %vm607_vm14, %v495_v18, %v639_v26  ;;  %v508_v36 = vadd.f32 %v1695_v24, %v507_v27  ;;  %v1235_v37 = vpop.f32.mrf.mxu0  ;;  %v1251_v38 = vpop.f32.mrf.mxu1  ;;  %v1147_v39 = vpack.c.bf16 %v689_v34, %v688_v16 }
 0x135   : > { %v1102_v40 = vpack.c.bf16 %v671_v35, %v670_v17  ;;  %v687_v41 = vsel %vm623_vm15, %v559_v19, %v655_v30  ;;  %vm612_vm0 = vcmp.gt.f32.partialorder %v516_v31, 0.0  ;;  %v644_v43 = vmul.f32 0.01, %v516_v31 }
 0x136   : > { %1171 = vst [vmem:[%s1710_s24 + $0x18] sm:$0xff] %v1107_v33   ;;  %v1142_v42 = vpack.c.bf16 %v687_v41, %v686_v22  ;;  %vm628_vm1 = vcmp.gt.f32.partialorder %v580_v32, 0.0  ;;  %v660_v44 = vmul.f32 0.01, %v580_v32  ;;  %v510_v45 = vpop.f32.mrf.mxu0  ;;  %v574_v46 = vpop.f32.mrf.mxu1  ;;  %1179 = vst [vmem:[%s1710_s24 + $0x58] sm:$0xff] %v1147_v39   ;;  %vm610_vm2 = vcmp.gt.f32.partialorder %v508_v36, 0.0 }
 0x137   : > { %1170 = vst [vmem:[%s1710_s24 + $0x10] sm:$0xff] %v1102_v40   ;;  %v642_v47 = vmul.f32 0.01, %v508_v36  ;;  %v572_v48 = vadd.f32 %v1695_v24, %v571_v28  ;;  %v519_v49 = vadd.f32 %v1235_v37, %v1695_v24  ;;  %v676_v50 = vsel %vm612_vm0, %v516_v31, %v644_v43 }
 0x138   : > { %1178 = vst [vmem:[%s1710_s24 + $0x50] sm:$0xff] %v1142_v42   ;;  %v583_v51 = vadd.f32 %v1251_v38, %v1695_v24  ;;  %v511_v52 = vadd.f32 %v1695_v24, %v510_v45  ;;  %v1238_v53 = vpop.f32.mrf.mxu0  ;;  %v1254_v54 = vpop.f32.mrf.mxu1  ;;  %v692_v55 = vsel %vm628_vm1, %v580_v32, %v660_v44  ;;  %v575_v63 = vadd.f32 %v1695_v24, %v574_v46 }
 0x139   : > { %v674_v56 = vsel %vm610_vm2, %v508_v36, %v642_v47  ;;  %vm626_vm3 = vcmp.gt.f32.partialorder %v572_v48, 0.0  ;;  %vm613_vm4 = vcmp.gt.f32.partialorder %v519_v49, 0.0  ;;  %v645_v57 = vmul.f32 0.01, %v519_v49 }
 0x13a   : > { %vm629_vm5 = vcmp.gt.f32.partialorder %v583_v51, 0.0  ;;  %v661_v58 = vmul.f32 0.01, %v583_v51  ;;  %vm611_vm6 = vcmp.gt.f32.partialorder %v511_v52, 0.0  ;;  %v523_v59 = vpop.f32.mrf.mxu0  ;;  %v587_v60 = vpop.f32.mrf.mxu1  ;;  %v658_v61 = vmul.f32 0.01, %v572_v48 }
 0x13b   : > { %v643_v62 = vmul.f32 0.01, %v511_v52  ;;  %v532_v0 = vadd.f32 %v1238_v53, %v1695_v24  ;;  %v677_v1 = vsel %vm613_vm4, %v519_v49, %v645_v57  ;;  %v596_v3 = vadd.f32 %v1254_v54, %v1695_v24 }
 0x13c   : > { %v693_v2 = vsel %vm629_vm5, %v583_v51, %v661_v58  ;;  %v524_v4 = vadd.f32 %v1695_v24, %v523_v59  ;;  %v1239_v5 = vpop.f32.mrf.mxu0  ;;  %v1255_v6 = vpop.f32.mrf.mxu1  ;;  %v1117_v7 = vpack.c.bf16 %v677_v1, %v676_v50  ;;  %vm627_vm7 = vcmp.gt.f32.partialorder %v575_v63, 0.0 }
 0x13d   : > { %v1157_v8 = vpack.c.bf16 %v693_v2, %v692_v55  ;;  %v675_v9 = vsel %vm611_vm6, %v511_v52, %v643_v62  ;;  %v659_v11 = vmul.f32 0.01, %v575_v63  ;;  %v648_v12 = vmul.f32 0.01, %v532_v0 }
 0x13e   : > { %v1112_v10 = vpack.c.bf16 %v675_v9, %v674_v56  ;;  %v690_v13 = vsel %vm626_vm3, %v572_v48, %v658_v61  ;;  %1173 = vst [vmem:[%s1710_s24 + $0x28] sm:$0xff] %v1117_v7   ;;  %vm616_vm8 = vcmp.gt.f32.partialorder %v532_v0, 0.0  ;;  %v664_v15 = vmul.f32 0.01, %v596_v3  ;;  %v526_v18 = vpop.f32.mrf.mxu0  ;;  %v590_v19 = vpop.f32.mrf.mxu1 }
 0x13f   : > { %1181 = vst [vmem:[%s1710_s24 + $0x68] sm:$0xff] %v1157_v8   ;;  %v691_v14 = vsel %vm627_vm7, %v575_v63, %v659_v11  ;;  %v588_v16 = vadd.f32 %v1695_v24, %v587_v60  ;;  %v535_v17 = vadd.f32 %v1239_v5, %v1695_v24  ;;  %vm632_vm9 = vcmp.gt.f32.partialorder %v596_v3, 0.0 }
 0x140   : > { %1172 = vst [vmem:[%s1710_s24 + $0x20] sm:$0xff] %v1112_v10   ;;  %v1152_v20 = vpack.c.bf16 %v691_v14, %v690_v13  ;;  %vm614_vm10 = vcmp.gt.f32.partialorder %v524_v4, 0.0  ;;  %v599_v21 = vadd.f32 %v1255_v6, %v1695_v24  ;;  %v680_v22 = vsel %vm616_vm8, %v532_v0, %v648_v12 }
 0x141   : > { %v646_v23 = vmul.f32 0.01, %v524_v4  ;;  %vm617_vm11 = vcmp.gt.f32.partialorder %v535_v17, 0.0  ;;  %v649_v25 = vmul.f32 0.01, %v535_v17  ;;  %v527_v27 = vadd.f32 %v1695_v24, %v526_v18 }
 0x142   : > { %1180 = vst [vmem:[%s1710_s24 + $0x60] sm:$0xff] %v1152_v20   ;;  %vm633_vm12 = vcmp.gt.f32.partialorder %v599_v21, 0.0  ;;  %v665_v26 = vmul.f32 0.01, %v599_v21  ;;  %v591_v28 = vadd.f32 %v1695_v24, %v590_v19  ;;  %v696_v29 = vsel %vm632_vm9, %v596_v3, %v664_v15 }
 0x143   : > { %vm630_vm13 = vcmp.gt.f32.partialorder %v588_v16, 0.0  ;;  %v662_v30 = vmul.f32 0.01, %v588_v16  ;;  %v681_v31 = vsel %vm617_vm11, %v535_v17, %v649_v25  ;;  %vm615_vm14 = vcmp.gt.f32.partialorder %v527_v27, 0.0 }
 0x144   : > { %v1127_v32 = vpack.c.bf16 %v681_v31, %v680_v22  ;;  %v697_v33 = vsel %vm633_vm12, %v599_v21, %v665_v26  ;;  %v647_v34 = vmul.f32 0.01, %v527_v27  ;;  %vm631_vm15 = vcmp.gt.f32.partialorder %v591_v28, 0.0 }
 0x145   : > { %v1167_v35 = vpack.c.bf16 %v697_v33, %v696_v29  ;;  %v663_v36 = vmul.f32 0.01, %v591_v28  ;;  %v678_v24 = vsel %vm614_vm10, %v524_v4, %v646_v23  ;;  %v694_v38 = vsel %vm630_vm13, %v588_v16, %v662_v30 }
 0x146   : > { %1175 = vst [vmem:[%s1710_s24 + $0x38] sm:$0xff] %v1127_v32   ;;  %v679_v37 = vsel %vm615_vm14, %v527_v27, %v647_v34 }
 0x147   : > { %1183 = vst [vmem:[%s1710_s24 + $0x78] sm:$0xff] %v1167_v35   ;;  %v1122_v39 = vpack.c.bf16 %v679_v37, %v678_v24  ;;  %v695_v40 = vsel %vm631_vm15, %v591_v28, %v663_v36 }
 0x148   : > { %v1162_v41 = vpack.c.bf16 %v695_v40, %v694_v38 }
 0x149   : > { %1174 = vst [vmem:[%s1710_s24 + $0x30] sm:$0xff] %v1122_v39  }
 0x14a   : > { %1182 = vst [vmem:[%s1710_s24 + $0x70] sm:$0xff] %v1162_v41  }
 0x14b   : > { %1440 = shalt.err (!%p1437_p3)
}
 0x14c   : > { %s1441_s18 = scalar_lea.hbm %s1757_s21, 2048  ;;  %s1445_s27 = scalar_lea.hbm %s1811_s3, 16384 }
 0x14d   : > { %p1442_p5 = scmp.ne.s32.totalorder %s1757_s21, %s1441_s18  ;;  %p1446_p9 = scmp.lt.s32.totalorder %s1757_s21, %s1811_s3 }
 0x14e   : > { %p1447_p11 = scmp.lt.s32.totalorder %s1445_s27, %s1441_s18 }
 0x14f   : > { %p1443_p7 = pnand %p1442_p5, %p1826_p4 }
 0x150   : > { %p1448_p10 = por %p1447_p11, %p1446_p9 }
 0x151   : > { %p1444_p6 = pneg %p1443_p7 }
 0x153   : > { %p1449_p1 = pnand %p1448_p10, %p1444_p6 }
 0x155   : > { %1452 = shalt.err (!%p1449_p1)
}
 0x156   : > { %s1518_s24 = smov 64   ;;  %s1519_s30 = smov 4  }
 0x157   : > { %1278 = dma.vmem_to_hbm [thread:$0]  (%p1826_p4), %s1759_s29, 2048, %s1757_s21, %s859_s15, %s1518_s24, %s1518_s24, %s1519_s30  }
 0x158 PF: > { %p1295_p8 = scmp.ge.s32.totalorder %s1511_s17, 2  ;;  %s888_s5 = sand.u32 1, %s1491_s12  }
 0x159   : > { %p1827_p12 = scmp.ne.s32.totalorder %s1818_s23, 0  ;;  %s889_s6 = scalar_lea.sflag [#allocation4], %s888_s5 }
 0x15b   : > { %p1289_p13 = pnand %p1295_p8, %p1827_p12 }
 0x15d   : > { %p1290_p0 = pneg %p1289_p13 }
 0x15f   : > { %1486 = dma.done.wait (%p1290_p0), %s889_s6, 2048  }
 0x160   : > { %1488 = vsyncadd (%p1290_p0), %s889_s6, 4294965248  ;;  %s20_s17 = sadd.s32 1, %s1511_s17   ;;  %s1828_s12 = smov %s1495_s13 }
 0x161   : > { %p17_p2 = scmp.ge.s32.totalorder %s20_s17, 10   ;;  %s1829_s13 = smov %s1499_s14 }
 0x162   : > { %s1830_s14 = smov %s1638_s19  ;;  %s1831_s15 = smov %s1507_s16 }
 0x163   : > { %s1832_s16 = smov %s1834_s28  ;;  %19 = sbr.rel (!%p17_p2) target bundleno = 7 (0x7), region = 85 }
 0x168   :  { %894 = vsyncpa [#allocation3], 1 }
 0x169   :  { %896 = vsyncpa [#allocation3 + $0x1], 1 }
 0x16a   :  { %897 = vsyncpa [#allocation6], 1 }
 0x16b   :  { %898 = vsyncpa [#allocation4], 1 }
 0x16c   :  { %900 = vsyncpa [#allocation4 + $0x1], 1 }

</bundles_post_ra>
